<compile_context>
chip_gen: v7x
topology: tpu7x:2x2x1
jax: 0.10.0
libtpu: 0.0.40
codegen_flags: <defaults>
</compile_context>

<pallas_src>
import functools

import jax
import jax.numpy as jnp
from jax.experimental import pallas as pl
from jax.experimental.pallas import tpu as pltpu

BN_EPS = 1e-5


def _decoder_kernel(batch, tile_b, needs_mask,
                    z_ref, si_ref, w_z_ref, w_si_ref, gamma_ref, beta_ref,
                    w_eff_ref, b_eff_ref, out_ref,
                    sum_ref, sumsq_ref, scale_ref, shift_ref):
    p = pl.program_id(0)            # 0: batch-stats pass, 1: normalize/generate pass
    b = pl.program_id(1)            # batch tile index
    nb = pl.num_programs(1)

    # fc: Linear(si+z -> latent, bias=False).  K is tiny, so it is recomputed in
    # both passes instead of staging a (B, latent) intermediate through HBM.
    h = (jnp.dot(si_ref[...], w_si_ref[...], preferred_element_type=jnp.float32)
         + jnp.dot(z_ref[...], w_z_ref[...], preferred_element_type=jnp.float32))

    @pl.when(p == 0)
    def _stats_pass():
        hv = h
        if needs_mask:   # static flag: only emitted when B % tile_b != 0
            rows = b * tile_b + jax.lax.broadcasted_iota(jnp.int32, h.shape, 0)
            hv = jnp.where(rows < batch, h, 0.0)

        @pl.when(b == 0)
        def _init():
            sum_ref[...] = jnp.zeros_like(sum_ref)
            sumsq_ref[...] = jnp.zeros_like(sumsq_ref)

        sum_ref[...] += jnp.sum(hv, axis=0, keepdims=True)
        sumsq_ref[...] += jnp.sum(hv * hv, axis=0, keepdims=True)

        @pl.when(b == nb - 1)
        def _finalize():
            inv_n = 1.0 / batch
            mean = sum_ref[...] * inv_n
            var = sumsq_ref[...] * inv_n - mean * mean     # biased variance (training BN)
            g_inv = gamma_ref[...] * jax.lax.rsqrt(var + BN_EPS)
            scale_ref[...] = g_inv                          # gamma / sqrt(var+eps)
            shift_ref[...] = beta_ref[...] - mean * g_inv   # beta - mean*gamma/sqrt(var+eps)

    @pl.when(p == 1)
    def _apply_pass():
        # BN + tanh fully in f32 (v5e VPU/EUP have no bf16); single fused affine.
        hn = jnp.tanh(h * scale_ref[...] + shift_ref[...])
        out_ref[...] = (
            jnp.dot(hn.astype(w_eff_ref.dtype), w_eff_ref[...],
                    preferred_element_type=jnp.float32)
            + b_eff_ref[...]                                # bias added in f32
        ).astype(out_ref.dtype)


def prepare_decoder_params(params, si_dim, compute_dtype=jnp.bfloat16):
    """One-time preprocessing: split the fc weight at the concat boundary, fold the
    bias-only generator stack into a single affine map, pad output to 128 lanes."""
    w_fc = jnp.asarray(params["w_fc"], jnp.float32)            # (si+z, latent)
    gamma = jnp.asarray(params["gamma"], jnp.float32).reshape(1, -1)
    beta = jnp.asarray(params["beta"], jnp.float32).reshape(1, -1)
    w_gen = jnp.asarray(params["w_gen"], jnp.float32)          # (L, latent, 64)
    b_gen = jnp.asarray(params["b_gen"], jnp.float32)          # (L, 1, 64)

    latent_dim = w_fc.shape[1]
    out_dim = w_gen.shape[-1]

    # EncoderBlock is a bare Linear (no nonlinearity) -> the whole stack is one
    # affine map:  h @ W0 + b0 -> ... ==  h @ (W0@W1@...) + (b folded through).
    w_eff = w_gen[0]
    b_eff = b_gen[0]
    for i in range(1, w_gen.shape[0]):
        w_eff = w_eff @ w_gen[i]
        b_eff = b_eff @ w_gen[i] + b_gen[i]

    # Lane-dense output: pad the 64 output features up to a 128-lane multiple so
    # the kernel's stores are unmasked full-width vst; wrapper slices back.
    out_pad = ((out_dim + 127) // 128) * 128
    w_eff = jnp.pad(w_eff, ((0, 0), (0, out_pad - out_dim)))
    b_eff = jnp.pad(b_eff, ((0, 0), (0, out_pad - out_dim)))

    return {
        "w_si": w_fc[:si_dim].astype(compute_dtype),           # (si_dim, latent)
        "w_z": w_fc[si_dim:].astype(compute_dtype),            # (z_size, latent)
        "gamma": gamma, "beta": beta,                          # f32
        "w_eff": w_eff.astype(compute_dtype),                  # (latent, out_pad)
        "b_eff": b_eff,                                        # f32 (post-accum add)
        "latent_dim": latent_dim, "out_dim": out_dim,
        "compute_dtype": compute_dtype,
    }


def decoder_forward(z, side_information, prep, *, tb_max=1024):
    """One pallas_call doing the whole hot path (two-pass BN over a batch grid)."""
    cd = prep["compute_dtype"]
    w_si, w_z = prep["w_si"], prep["w_z"]
    gamma, beta = prep["gamma"], prep["beta"]
    w_eff, b_eff = prep["w_eff"], prep["b_eff"]

    B = z.shape[0]
    z_size = z.shape[1]
    si_dim = side_information.shape[1]
    latent_dim = prep["latent_dim"]
    out_pad = w_eff.shape[1]

    z_in = z.astype(cd)
    si_in = side_information.astype(cd)

    # Batch tile: full batch if small, otherwise tb_max rows (multiple of 8).
    # tb_max=1024 keeps double-buffered tiles ~1.3 MiB, far under v7x's 64 MiB VMEM.
    tb = B if B <= tb_max else tb_max
    nb = pl.cdiv(B, tb)
    needs_mask = (B % tb) != 0

    kernel = functools.partial(_decoder_kernel, B, tb, needs_mask)

    fixed = lambda p, b: (0, 0)    # weights: fetched once, stay VMEM-resident
    rows = lambda p, b: (b, 0)     # activations: tiled over the batch
    # Output is only written in pass 1; `b * p` pins the block index to 0 during
    # the stats pass so no stale output buffer is ever flushed to HBM.
    out_map = lambda p, b: (b * p, 0)

    grid_spec = pltpu.PrefetchScalarGridSpec(
        num_scalar_prefetch=0,
        grid=(2, nb),                                   # (pass, batch_tile)
        in_specs=[
            pl.BlockSpec((tb, z_size), rows),           # z
            pl.BlockSpec((tb, si_dim), rows),           # side_information
            pl.BlockSpec((z_size, latent_dim), fixed),  # w_z
            pl.BlockSpec((si_dim, latent_dim), fixed),  # w_si
            pl.BlockSpec((1, latent_dim), fixed),       # gamma
            pl.BlockSpec((1, latent_dim), fixed),       # beta
            pl.BlockSpec((latent_dim, out_pad), fixed), # fused generator weight
            pl.BlockSpec((1, out_pad), fixed),          # fused generator bias
        ],
        out_specs=pl.BlockSpec((tb, out_pad), out_map),
        scratch_shapes=[pltpu.VMEM((1, latent_dim), jnp.float32)] * 4,  # sum/sumsq/scale/shift
    )

    isz = jnp.dtype(cd).itemsize
    cost = pl.CostEstimate(
        flops=int(2 * 2 * B * (z_size + si_dim) * latent_dim      # fc, both passes
                  + 2 * B * latent_dim * out_pad),                # fused generator
        transcendentals=int(B * latent_dim),                      # tanh
        bytes_accessed=int(2 * B * (z_size + si_dim) * isz        # inputs read twice
                           + B * out_pad * 4                      # output
                           + (z_size + si_dim) * latent_dim * isz
                           + latent_dim * out_pad * isz),
    )

    out_padded = pl.pallas_call(
        kernel,
        out_shape=jax.ShapeDtypeStruct((B, out_pad), jnp.float32),
        grid_spec=grid_spec,
        compiler_params=pltpu.CompilerParams(
            # Both axes "arbitrary": the pass axis carries the BN-stats dependency,
            # and sharding the batch axis across v7x's two TensorCores would give
            # per-core (wrong) batch statistics without a cross-core combine.
            # TODO(synk): per-core partial stats + cross-core combine for v7x 2-TC speedup.
            dimension_semantics=("arbitrary", "arbitrary"),
            # Explicit VMEM budget: fits the 32 MiB scoped default on every
            # generation and v7x's 64 MiB physical VMEM with large headroom.
            vmem_limit_bytes=32 * 1024 * 1024,
        ),
        cost_estimate=cost,
    )(z_in, si_in, w_z, w_si, gamma, beta, w_eff, b_eff)

    return out_padded[:, :prep["out_dim"]]


def _reference_forward(z, side_information, params):
    """Plain-JAX, f32, PyTorch-faithful reference."""
    z_cat = jnp.concatenate([side_information, z], axis=1).astype(jnp.float32)
    h = z_cat @ params["w_fc"]
    mean = jnp.mean(h, axis=0, keepdims=True)
    var = jnp.mean((h - mean) ** 2, axis=0, keepdims=True)
    h = (h - mean) / jnp.sqrt(var + BN_EPS)
    h = h * params["gamma"] + params["beta"]
    h = jnp.tanh(h)
    for i in range(params["w_gen"].shape[0]):
        h = h @ params["w_gen"][i] + params["b_gen"][i]
    return h


def init_params(key, z_size, si_dim, latent_dim, n_layers, out_dim=64):
    """Deterministic PyTorch-style init (uniform(-1/sqrt(fan_in), 1/sqrt(fan_in)))."""
    k_fc, k_w, k_b = jax.random.split(key, 3)
    in_dim = z_size + si_dim

    bound_fc = 1.0 / jnp.sqrt(in_dim)
    w_fc = jax.random.uniform(k_fc, (in_dim, latent_dim),
                              minval=-bound_fc, maxval=bound_fc, dtype=jnp.float32)

    gamma = jnp.ones((1, latent_dim), jnp.float32)    # BatchNorm1d affine init
    beta = jnp.zeros((1, latent_dim), jnp.float32)

    bound_g = 1.0 / jnp.sqrt(latent_dim)
    w_gen = jax.random.uniform(k_w, (n_layers, latent_dim, out_dim),
                               minval=-bound_g, maxval=bound_g, dtype=jnp.float32)
    b_gen = jax.random.uniform(k_b, (n_layers, 1, out_dim),
                               minval=-bound_g, maxval=bound_g, dtype=jnp.float32)

    return {"w_fc": w_fc, "gamma": gamma, "beta": beta,
            "w_gen": w_gen, "b_gen": b_gen}


if __name__ == "__main__":
    # Small shapes consistent with the module (B > 1 needed for training-mode BN;
    # latent_dim == 64 so stacked EncoderBlocks compose, as the PyTorch code requires).
    B = 8
    z_size = 16
    si_dim = 8
    latent_dim = 64
    n_layers = 2

    key = jax.random.PRNGKey(0)
    k_z, k_si, k_p = jax.random.split(key, 3)

    z = jax.random.normal(k_z, (B, z_size), dtype=jnp.float32)
    side_information = jax.random.normal(k_si, (B, si_dim), dtype=jnp.float32)
    params = init_params(k_p, z_size, si_dim, latent_dim, n_layers)

    ref = jax.block_until_ready(_reference_forward(z, side_information, params))

    # f32 compute path: structural check against the PyTorch-faithful reference.
    prep_f32 = prepare_decoder_params(params, si_dim, compute_dtype=jnp.float32)
    out_f32 = jax.block_until_ready(decoder_forward(z, side_information, prep_f32))
    assert out_f32.shape == (B, 64), out_f32.shape
    assert jnp.allclose(out_f32, ref, atol=2e-3, rtol=2e-3), \
        float(jnp.max(jnp.abs(out_f32 - ref)))

    # bf16-weights path (v6e/v7x MXU fast path; f32 accumulation, f32 BN/tanh).
    prep_bf16 = prepare_decoder_params(params, si_dim, compute_dtype=jnp.bfloat16)
    out_bf16 = jax.block_until_ready(decoder_forward(z, side_information, prep_bf16))
    assert out_bf16.shape == (B, 64), out_bf16.shape
    assert jnp.allclose(out_bf16, ref, atol=2e-2, rtol=2e-2), \
        float(jnp.max(jnp.abs(out_bf16 - ref)))

    print("KERNEL_OK")
</pallas_src>

<mosaic_0001>
module attributes {stable_mosaic.version = 11 : i64} {
  func.func @_decoder_kernel(%arg0: i32, %arg1: i32, %arg2: memref<8x16xf32, #tpu.memory_space<vmem>>, %arg3: memref<8x8xf32, #tpu.memory_space<vmem>>, %arg4: memref<16x64xf32, #tpu.memory_space<vmem>>, %arg5: memref<8x64xf32, #tpu.memory_space<vmem>>, %arg6: memref<1x64xf32, #tpu.memory_space<vmem>>, %arg7: memref<1x64xf32, #tpu.memory_space<vmem>>, %arg8: memref<64x128xf32, #tpu.memory_space<vmem>>, %arg9: memref<1x128xf32, #tpu.memory_space<vmem>>, %arg10: memref<8x128xf32, #tpu.memory_space<vmem>>, %arg11: memref<1x64xf32, #tpu.memory_space<vmem>>, %arg12: memref<1x64xf32, #tpu.memory_space<vmem>>, %arg13: memref<1x64xf32, #tpu.memory_space<vmem>>, %arg14: memref<1x64xf32, #tpu.memory_space<vmem>>) attributes {dimension_semantics = [#tpu.dimension_semantics<arbitrary>, #tpu.dimension_semantics<arbitrary>], iteration_bounds = array<i64: 2, 1>, scalar_prefetch = 0 : i64, scratch_operands = 4 : i64, tpu.core_type = #tpu.core_type<tc>, window_params = [{transform_indices = @transform_0, window_bounds = array<i64: 8, 16>}, {transform_indices = @transform_1, window_bounds = array<i64: 8, 8>}, {pipeline_mode = #tpu.pipeline_mode<synchronous>, transform_indices = @transform_2, window_bounds = array<i64: 16, 64>}, {pipeline_mode = #tpu.pipeline_mode<synchronous>, transform_indices = @transform_3, window_bounds = array<i64: 8, 64>}, {pipeline_mode = #tpu.pipeline_mode<synchronous>, transform_indices = @transform_4, window_bounds = array<i64: 1, 64>}, {pipeline_mode = #tpu.pipeline_mode<synchronous>, transform_indices = @transform_5, window_bounds = array<i64: 1, 64>}, {pipeline_mode = #tpu.pipeline_mode<synchronous>, transform_indices = @transform_6, window_bounds = array<i64: 64, 128>}, {pipeline_mode = #tpu.pipeline_mode<synchronous>, transform_indices = @transform_7, window_bounds = array<i64: 1, 128>}, {transform_indices = @transform_8, window_bounds = array<i64: 8, 128>}]} {
    %c0 = arith.constant 0 : index
    %c0_0 = arith.constant 0 : index
    %0 = vector.load %arg3[%c0, %c0_0] : memref<8x8xf32, #tpu.memory_space<vmem>>, vector<8x8xf32>
    %c0_1 = arith.constant 0 : index
    %c0_2 = arith.constant 0 : index
    %1 = vector.load %arg5[%c0_1, %c0_2] : memref<8x64xf32, #tpu.memory_space<vmem>>, vector<8x64xf32>
    %cst = arith.constant dense<0.000000e+00> : vector<8x64xf32>
    %2 = tpu.matmul %0, %1, %cst {dimension_numbers = #tpu.dot_dimension_numbers<[1], [0], [0], [1], [0, 0, 1, 1], [], []>} : vector<8x8xf32>, vector<8x64xf32>, vector<8x64xf32> -> vector<8x64xf32>
    %c0_3 = arith.constant 0 : index
    %c0_4 = arith.constant 0 : index
    %3 = vector.load %arg2[%c0_3, %c0_4] : memref<8x16xf32, #tpu.memory_space<vmem>>, vector<8x16xf32>
    %c0_5 = arith.constant 0 : index
    %c0_6 = arith.constant 0 : index
    %4 = vector.load %arg4[%c0_5, %c0_6] : memref<16x64xf32, #tpu.memory_space<vmem>>, vector<16x64xf32>
    %cst_7 = arith.constant dense<0.000000e+00> : vector<8x64xf32>
    %5 = tpu.matmul %3, %4, %cst_7 {dimension_numbers = #tpu.dot_dimension_numbers<[1], [0], [0], [1], [0, 0, 1, 1], [], []>} : vector<8x16xf32>, vector<16x64xf32>, vector<8x64xf32> -> vector<8x64xf32>
    %6 = arith.addf %2, %5 : vector<8x64xf32>
    %c0_i32 = arith.constant 0 : i32
    %7 = arith.cmpi eq, %arg0, %c0_i32 : i32
    %8 = arith.extui %7 : i1 to i32
    %c0_i32_8 = arith.constant 0 : i32
    %9 = arith.cmpi ne, %8, %c0_i32_8 : i32
    scf.if %9 {
      %c0_i32_10 = arith.constant 0 : i32
      %13 = arith.cmpi eq, %arg1, %c0_i32_10 : i32
      %14 = arith.extui %13 : i1 to i32
      %c0_i32_11 = arith.constant 0 : i32
      %15 = arith.cmpi ne, %14, %c0_i32_11 : i32
      scf.if %15 {
        %cst_24 = arith.constant 0.000000e+00 : f32
        %30 = vector.broadcast %cst_24 : f32 to vector<1x64xf32>
        %c0_25 = arith.constant 0 : index
        %c0_26 = arith.constant 0 : index
        %31 = vector.load %arg11[%c0_25, %c0_26] : memref<1x64xf32, #tpu.memory_space<vmem>>, vector<1x64xf32>
        tpu.vector_store %arg11[%c0_25, %c0_26], %30 {strides = array<i32>} : memref<1x64xf32, #tpu.memory_space<vmem>>, vector<1x64xf32>,
        %cst_27 = arith.constant 0.000000e+00 : f32
        %32 = vector.broadcast %cst_27 : f32 to vector<1x64xf32>
        %c0_28 = arith.constant 0 : index
        %c0_29 = arith.constant 0 : index
        %33 = vector.load %arg12[%c0_28, %c0_29] : memref<1x64xf32, #tpu.memory_space<vmem>>, vector<1x64xf32>
        tpu.vector_store %arg12[%c0_28, %c0_29], %32 {strides = array<i32>} : memref<1x64xf32, #tpu.memory_space<vmem>>, vector<1x64xf32>,
      } else {
      }
      %c0_12 = arith.constant 0 : index
      %c0_13 = arith.constant 0 : index
      %16 = vector.load %arg11[%c0_12, %c0_13] : memref<1x64xf32, #tpu.memory_space<vmem>>, vector<1x64xf32>
      %cst_14 = arith.constant dense<0.000000e+00> : vector<64xf32>
      %17 = vector.multi_reduction <add>, %6, %cst_14 [0] : vector<8x64xf32> to vector<64xf32>
      %18 = vector.shape_cast %17 : vector<64xf32> to vector<1x64xf32>
      %19 = arith.addf %16, %18 : vector<1x64xf32>
      %c0_15 = arith.constant 0 : index
      %c0_16 = arith.constant 0 : index
      %20 = vector.load %arg11[%c0_15, %c0_16] : memref<1x64xf32, #tpu.memory_space<vmem>>, vector<1x64xf32>
      tpu.vector_store %arg11[%c0_15, %c0_16], %19 {strides = array<i32>} : memref<1x64xf32, #tpu.memory_space<vmem>>, vector<1x64xf32>,
      %c0_17 = arith.constant 0 : index
      %c0_18 = arith.constant 0 : index
      %21 = vector.load %arg12[%c0_17, %c0_18] : memref<1x64xf32, #tpu.memory_space<vmem>>, vector<1x64xf32>
      %22 = arith.mulf %6, %6 : vector<8x64xf32>
      %cst_19 = arith.constant dense<0.000000e+00> : vector<64xf32>
      %23 = vector.multi_reduction <add>, %22, %cst_19 [0] : vector<8x64xf32> to vector<64xf32>
      %24 = vector.shape_cast %23 : vector<64xf32> to vector<1x64xf32>
      %25 = arith.addf %21, %24 : vector<1x64xf32>
      %c0_20 = arith.constant 0 : index
      %c0_21 = arith.constant 0 : index
      %26 = vector.load %arg12[%c0_20, %c0_21] : memref<1x64xf32, #tpu.memory_space<vmem>>, vector<1x64xf32>
      tpu.vector_store %arg12[%c0_20, %c0_21], %25 {strides = array<i32>} : memref<1x64xf32, #tpu.memory_space<vmem>>, vector<1x64xf32>,
      %c0_i32_22 = arith.constant 0 : i32
      %27 = arith.cmpi eq, %arg1, %c0_i32_22 : i32
      %28 = arith.extui %27 : i1 to i32
      %c0_i32_23 = arith.constant 0 : i32
      %29 = arith.cmpi ne, %28, %c0_i32_23 : i32
      scf.if %29 {
        %c0_24 = arith.constant 0 : index
        %c0_25 = arith.constant 0 : index
        %30 = vector.load %arg11[%c0_24, %c0_25] : memref<1x64xf32, #tpu.memory_space<vmem>>, vector<1x64xf32>
        %cst_26 = arith.constant 1.250000e-01 : f32
        %31 = vector.broadcast %cst_26 : f32 to vector<1x64xf32>
        %32 = arith.mulf %30, %31 : vector<1x64xf32>
        %c0_27 = arith.constant 0 : index
        %c0_28 = arith.constant 0 : index
        %33 = vector.load %arg12[%c0_27, %c0_28] : memref<1x64xf32, #tpu.memory_space<vmem>>, vector<1x64xf32>
        %cst_29 = arith.constant 1.250000e-01 : f32
        %34 = vector.broadcast %cst_29 : f32 to vector<1x64xf32>
        %35 = arith.mulf %33, %34 : vector<1x64xf32>
        %36 = arith.mulf %32, %32 : vector<1x64xf32>
        %37 = arith.subf %35, %36 : vector<1x64xf32>
        %c0_30 = arith.constant 0 : index
        %c0_31 = arith.constant 0 : index
        %38 = vector.load %arg6[%c0_30, %c0_31] : memref<1x64xf32, #tpu.memory_space<vmem>>, vector<1x64xf32>
        %cst_32 = arith.constant 9.99999974E-6 : f32
        %39 = vector.broadcast %cst_32 : f32 to vector<1x64xf32>
        %40 = arith.addf %37, %39 : vector<1x64xf32>
        %41 = math.rsqrt %40 : vector<1x64xf32>
        %42 = arith.mulf %38, %41 : vector<1x64xf32>
        %c0_33 = arith.constant 0 : index
        %c0_34 = arith.constant 0 : index
        %43 = vector.load %arg13[%c0_33, %c0_34] : memref<1x64xf32, #tpu.memory_space<vmem>>, vector<1x64xf32>
        tpu.vector_store %arg13[%c0_33, %c0_34], %42 {strides = array<i32>} : memref<1x64xf32, #tpu.memory_space<vmem>>, vector<1x64xf32>,
        %c0_35 = arith.constant 0 : index
        %c0_36 = arith.constant 0 : index
        %44 = vector.load %arg7[%c0_35, %c0_36] : memref<1x64xf32, #tpu.memory_space<vmem>>, vector<1x64xf32>
        %45 = arith.mulf %32, %42 : vector<1x64xf32>
        %46 = arith.subf %44, %45 : vector<1x64xf32>
        %c0_37 = arith.constant 0 : index
        %c0_38 = arith.constant 0 : index
        %47 = vector.load %arg14[%c0_37, %c0_38] : memref<1x64xf32, #tpu.memory_space<vmem>>, vector<1x64xf32>
        tpu.vector_store %arg14[%c0_37, %c0_38], %46 {strides = array<i32>} : memref<1x64xf32, #tpu.memory_space<vmem>>, vector<1x64xf32>,
      } else {
      }
    } else {
    }
    %c1_i32 = arith.constant 1 : i32
    %10 = arith.cmpi eq, %arg0, %c1_i32 : i32
    %11 = arith.extui %10 : i1 to i32
    %c0_i32_9 = arith.constant 0 : i32
    %12 = arith.cmpi ne, %11, %c0_i32_9 : i32
    scf.if %12 {
      %c0_10 = arith.constant 0 : index
      %c0_11 = arith.constant 0 : index
      %13 = vector.load %arg13[%c0_10, %c0_11] : memref<1x64xf32, #tpu.memory_space<vmem>>, vector<1x64xf32>
      %14 = vector.broadcast %13 : vector<1x64xf32> to vector<8x64xf32>
      %15 = arith.mulf %6, %14 : vector<8x64xf32>
      %c0_12 = arith.constant 0 : index
      %c0_13 = arith.constant 0 : index
      %16 = vector.load %arg14[%c0_12, %c0_13] : memref<1x64xf32, #tpu.memory_space<vmem>>, vector<1x64xf32>
      %17 = vector.broadcast %16 : vector<1x64xf32> to vector<8x64xf32>
      %18 = arith.addf %15, %17 : vector<8x64xf32>
      %19 = math.tanh %18 : vector<8x64xf32>
      %c0_14 = arith.constant 0 : index
      %c0_15 = arith.constant 0 : index
      %20 = vector.load %arg8[%c0_14, %c0_15] : memref<64x128xf32, #tpu.memory_space<vmem>>, vector<64x128xf32>
      %cst_16 = arith.constant dense<0.000000e+00> : vector<8x128xf32>
      %21 = tpu.matmul %19, %20, %cst_16 {dimension_numbers = #tpu.dot_dimension_numbers<[1], [0], [0], [1], [0, 0, 1, 1], [], []>} : vector<8x64xf32>, vector<64x128xf32>, vector<8x128xf32> -> vector<8x128xf32>
      %c0_17 = arith.constant 0 : index
      %c0_18 = arith.constant 0 : index
      %22 = vector.load %arg9[%c0_17, %c0_18] : memref<1x128xf32, #tpu.memory_space<vmem>>, vector<1x128xf32>
      %23 = vector.broadcast %22 : vector<1x128xf32> to vector<8x128xf32>
      %24 = arith.addf %21, %23 : vector<8x128xf32>
      %c0_19 = arith.constant 0 : index
      %c0_20 = arith.constant 0 : index
      %25 = vector.load %arg10[%c0_19, %c0_20] : memref<8x128xf32, #tpu.memory_space<vmem>>, vector<8x128xf32>
      tpu.vector_store %arg10[%c0_19, %c0_20], %24 {strides = array<i32>} : memref<8x128xf32, #tpu.memory_space<vmem>>, vector<8x128xf32>,
    } else {
    }
    return
  }
  func.func @transform_0(%arg0: i32, %arg1: i32) -> (i32, i32) {
    %c0_i32 = arith.constant 0 : i32
    %c0_i32_0 = arith.constant 0 : i32
    return %arg1, %c0_i32 : i32, i32
  }
  func.func @transform_1(%arg0: i32, %arg1: i32) -> (i32, i32) {
    %c0_i32 = arith.constant 0 : i32
    %c0_i32_0 = arith.constant 0 : i32
    return %arg1, %c0_i32 : i32, i32
  }
  func.func @transform_2(%arg0: i32, %arg1: i32) -> (i32, i32) {
    %c0_i32 = arith.constant 0 : i32
    %c0_i32_0 = arith.constant 0 : i32
    %c0_i32_1 = arith.constant 0 : i32
    return %c0_i32, %c0_i32_0 : i32, i32
  }
  func.func @transform_3(%arg0: i32, %arg1: i32) -> (i32, i32) {
    %c0_i32 = arith.constant 0 : i32
    %c0_i32_0 = arith.constant 0 : i32
    %c0_i32_1 = arith.constant 0 : i32
    return %c0_i32, %c0_i32_0 : i32, i32
  }
  func.func @transform_4(%arg0: i32, %arg1: i32) -> (i32, i32) {
    %c0_i32 = arith.constant 0 : i32
    %c0_i32_0 = arith.constant 0 : i32
    %c0_i32_1 = arith.constant 0 : i32
    return %c0_i32, %c0_i32_0 : i32, i32
  }
  func.func @transform_5(%arg0: i32, %arg1: i32) -> (i32, i32) {
    %c0_i32 = arith.constant 0 : i32
    %c0_i32_0 = arith.constant 0 : i32
    %c0_i32_1 = arith.constant 0 : i32
    return %c0_i32, %c0_i32_0 : i32, i32
  }
  func.func @transform_6(%arg0: i32, %arg1: i32) -> (i32, i32) {
    %c0_i32 = arith.constant 0 : i32
    %c0_i32_0 = arith.constant 0 : i32
    %c0_i32_1 = arith.constant 0 : i32
    return %c0_i32, %c0_i32_0 : i32, i32
  }
  func.func @transform_7(%arg0: i32, %arg1: i32) -> (i32, i32) {
    %c0_i32 = arith.constant 0 : i32
    %c0_i32_0 = arith.constant 0 : i32
    %c0_i32_1 = arith.constant 0 : i32
    return %c0_i32, %c0_i32_0 : i32, i32
  }
  func.func @transform_8(%arg0: i32, %arg1: i32) -> (i32, i32) {
    %0 = arith.muli %arg1, %arg0 : i32
    %c0_i32 = arith.constant 0 : i32
    %c0_i32_0 = arith.constant 0 : i32
    return %0, %c0_i32 : i32, i32
  }
}

</mosaic_0001>

<bundles_post_ra>
// kernel: tpu_custom_call.1
= control target key start
LH: loop header
LB: loop body
LE: loop exit
PB: predicated region body
PF: predicated region fallthrough
CT: control target
= control target key end

     0   :  { %13 = vsyncpa [#allocation7], 0  ;;  %s1405_s0 = inlined_call_operand.hbm [shape: f32[8,16], index: 0, kind: input, shape index: {}]   ;;  %s1406_s1 = inlined_call_operand.hbm [shape: f32[8,8], index: 1, kind: input, shape index: {}]   ;;  %s1407_s2 = inlined_call_operand.hbm [shape: f32[16,64], index: 2, kind: input, shape index: {}]   ;;  %s1408_s3 = inlined_call_operand.vmem [shape: f32[8,64], index: 3, kind: input, shape index: {}]   ;;  %s1409_s4 = inlined_call_operand.vmem [shape: f32[1,64], index: 4, kind: input, shape index: {}]   ;;  %s1410_s5 = inlined_call_operand.vmem [shape: f32[1,64], index: 5, kind: input, shape index: {}]   ;;  %s1411_s6 = inlined_call_operand.hbm [shape: f32[64,128], index: 6, kind: input, shape index: {}]   ;;  %s1412_s7 = inlined_call_operand.vmem [shape: f32[1,128], index: 7, kind: input, shape index: {}]   ;;  %s1413_s8 = inlined_call_operand.hbm [shape: f32[8,128], index: 8, kind: output, shape index: {}]  }
   0x1   :  { %14 = vsyncpa [#allocation10], 0 }
   0x2   :  { %15 = vsyncpa [#allocation13], 0 }
   0x3   :  { %16 = vsyncpa [#allocation8], 0 }
   0x4   :  { %18 = vsyncpa [#allocation8 + $0x1], 0  ;;  %s1211_s27 = smov 0   ;;  %s1213_s28 = smov 0  }
   0x5   :  { %s1215_s29 = smov 0  }
   0x6 LB: > { %s1152_s30 = smov [#allocation9]   ;;  %s1417_s10 = sadd.s32 4294967295, %s1150_s29   ;;  %s1150_s29 = sphi %s1215_s29, %s24_s29   ;;  %s1146_s28 = sphi %s1213_s28, %s1430_s28   ;;  %s1142_s27 = sphi %s1211_s27, %s1429_s27  }
   0x7   : > { %s275_s9 = sshll.u32 %s1152_s30, 4  ;;  %p801_p0 = scmp.ge.s32.totalorder %s1150_s29, 1  ;;  %s276_s9 = int_to_ptr.vmem [resolvable:$true] %s275_s9 }
   0x8   : > { %p247_p1 = scmp.lt.s32.totalorder %s1150_s29, 3  ;;  %p1232_p2 = scmp.eq.s32.totalorder %s1417_s10, 0 }
   0x9   : > { %s36_s14 = sadd.s32 1, %s1146_s28  ;;  %s1153_s17 = smov [#allocation6]  }
   0xa   : > { %s1418_s12 = scalar_select %p1232_p2, 1, 0 }
   0xb   : > { %p1236_p3 = pnand %p801_p0, %p247_p1  ;;  %p1249_p6 = scmp.ge.s32.totalorder %s36_s14, 2 }
   0xc   : > { %s262_s18 = sshll.u32 %s1153_s17, 4  ;;  %s974_s21 = scalar_lea.hbm %s1406_s1, 128  ;;  %s263_s18 = int_to_ptr.vmem [resolvable:$true] %s262_s18 }
   0xd   : > { %s1419_s13 = scalar_select %p1236_p3, 1, 0 }
   0xe   : > { %p904_p4 = pneg %p1236_p3  ;;  %p975_p7 = scmp.ne.s32.totalorder %s1406_s1, %s974_s21 }
   0xf   : > { %s1421_s16 = scalar_select %p1249_p6, 1, 0 }
  0x10   : > { %p1245_p5 = pnand %p1232_p2, %p904_p4  ;;  %p981_p11 = scmp.lt.u32.totalorder %s974_s21, %s1406_s1 }
  0x12   : > { %p1261_p8 = pneg %p1245_p5 }
  0x14   : > { %p977_p9 = pnand %p1261_p8, %p975_p7 }
  0x16   : > { %p978_p10 = pneg %p977_p9 }
  0x18   : > { %p983_p12 = pnand %p981_p11, %p978_p10 }
  0x1a   : > { %986 = shalt.err (!%p983_p12)
}
  0x1b   : > { %s987_s30 = scalar_lea.vmem %s276_s9, 128  ;;  %p995_p4 = scmp.lt.s32.totalorder %s276_s9, %s276_s9 }
  0x1c   : > { %p988_p13 = scmp.ne.s32.totalorder %s276_s9, %s987_s30  ;;  %p996_p2 = scmp.lt.s32.totalorder %s987_s30, %s987_s30 }
  0x1e   : > { %p990_p0 = pnand %p988_p13, %p1261_p8  ;;  %p997_p3 = por %p996_p2, %p995_p4 }
  0x20   : > { %p991_p1 = pneg %p990_p0 }
  0x22   : > { %p998_p6 = pnand %p997_p3, %p991_p1 }
  0x24   : > { %1001 = shalt.err (!%p998_p6)
}
  0x25   : > { %910 = dma.hbm_to_vmem [thread:$0]  (!%p1245_p5), %s1406_s1, 128, %s276_s9, [#allocation10]  }
  0x26   : > { %p1423_p7 = scmp.ne.s32.totalorder %s1421_s16, 0  ;;  %s1154_s20 = smov [#allocation11]  }
  0x27   : > { %s285_s21 = sshll.u32 %s1154_s20, 4  ;;  %s1002_s25 = scalar_lea.hbm %s1405_s0, 128  ;;  %s286_s21 = int_to_ptr.vmem [resolvable:$true] %s285_s21 }
  0x28   : > { %s1432_s14 = smov (%p1423_p7, %s36_s14), 0  ;;  %p1003_p2 = scmp.ne.s32.totalorder %s1405_s0, %s1002_s25 }
  0x29   : > { %p1009_p9 = scmp.lt.u32.totalorder %s1002_s25, %s1405_s0 }
  0x2a   : > { %p1005_p3 = pnand %p1003_p2, %p1261_p8 }
  0x2c   : > { %p1006_p6 = pneg %p1005_p3 }
  0x2e   : > { %p1011_p10 = pnand %p1009_p9, %p1006_p6 }
  0x30   : > { %1014 = shalt.err (!%p1011_p10)
}
  0x31   : > { %s1015_s9 = scalar_lea.vmem %s263_s18, 128  ;;  %p1023_p0 = scmp.lt.s32.totalorder %s263_s18, %s263_s18 }
  0x32   : > { %p1016_p11 = scmp.ne.s32.totalorder %s263_s18, %s1015_s9  ;;  %p1024_p1 = scmp.lt.s32.totalorder %s1015_s9, %s1015_s9 }
  0x34   : > { %p1018_p12 = pnand %p1016_p11, %p1261_p8  ;;  %p1025_p4 = por %p1024_p1, %p1023_p0 }
  0x36   : > { %p1019_p13 = pneg %p1018_p12 }
  0x38   : > { %p1026_p7 = pnand %p1025_p4, %p1019_p13 }
  0x3a   : > { %1029 = shalt.err (!%p1026_p7)
}
  0x3b   : > { %907 = dma.hbm_to_vmem [thread:$0]  (!%p1245_p5), %s1405_s0, 128, %s263_s18, [#allocation7]  }
  0x3c   : > { %s1030_s25 = scalar_lea.hbm %s1407_s2, 256 }
  0x3d   : > { %p1031_p2 = scmp.ne.s32.totalorder %s1407_s2, %s1030_s25  ;;  %p1037_p9 = scmp.lt.u32.totalorder %s1030_s25, %s1407_s2 }
  0x3f   : > { %p1033_p3 = pnand %p1031_p2, %p1261_p8 }
  0x41   : > { %p1034_p6 = pneg %p1033_p3 }
  0x43   : > { %p1039_p10 = pnand %p1037_p9, %p1034_p6 }
  0x45   : > { %1042 = shalt.err (!%p1039_p10)
}
  0x46   : > { %s1043_s9 = scalar_lea.vmem %s286_s21, 256  ;;  %p1051_p0 = scmp.lt.s32.totalorder %s286_s21, %s286_s21 }
  0x47   : > { %p1044_p11 = scmp.ne.s32.totalorder %s286_s21, %s1043_s9  ;;  %p1052_p1 = scmp.lt.s32.totalorder %s1043_s9, %s1043_s9 }
  0x49   : > { %p1046_p12 = pnand %p1044_p11, %p1261_p8  ;;  %p1053_p4 = por %p1052_p1, %p1051_p0 }
  0x4b   : > { %p1047_p13 = pneg %p1046_p12 }
  0x4d   : > { %p1054_p7 = pnand %p1053_p4, %p1047_p13 }
  0x4f   : > { %1057 = shalt.err (!%p1054_p7)
}
  0x50   : > { %s1155_s18 = smov 128   ;;  %s1156_s16 = smov 8  }
  0x51   : > { %913 = dma.hbm_to_vmem [thread:$0]  (!%p1245_p5), %s1407_s2, 256, %s286_s21, [#allocation10], %s1155_s18, %s1155_s18, %s1156_s16  }
  0x52   : > { %s1157_s23 = smov [#allocation12]   ;;  %s1058_s17 = scalar_lea.hbm %s1411_s6, 1024 }
  0x53   : > { %s307_s25 = sshll.u32 %s1157_s23, 4  ;;  %p1059_p2 = scmp.ne.s32.totalorder %s1411_s6, %s1058_s17  ;;  %s308_s25 = int_to_ptr.vmem [resolvable:$true] %s307_s25 }
  0x54   : > { %p1065_p9 = scmp.lt.u32.totalorder %s1058_s17, %s1411_s6 }
  0x55   : > { %p1061_p3 = pnand %p1059_p2, %p1261_p8 }
  0x57   : > { %p1062_p6 = pneg %p1061_p3 }
  0x59   : > { %p1067_p10 = pnand %p1065_p9, %p1062_p6 }
  0x5b   : > { %1070 = shalt.err (!%p1067_p10)
}
  0x5c   : > { %s1071_s21 = scalar_lea.vmem %s308_s25, 1024  ;;  %p1079_p0 = scmp.lt.s32.totalorder %s308_s25, %s308_s25 }
  0x5d   : > { %p1072_p11 = scmp.ne.s32.totalorder %s308_s25, %s1071_s21  ;;  %p1080_p1 = scmp.lt.s32.totalorder %s1071_s21, %s1071_s21 }
  0x5f   : > { %p1074_p12 = pnand %p1072_p11, %p1261_p8  ;;  %p1081_p4 = por %p1080_p1, %p1079_p0 }
  0x61   : > { %p1075_p13 = pneg %p1074_p12 }
  0x63   : > { %p1082_p7 = pnand %p1081_p4, %p1075_p13 }
  0x65   : > { %1085 = shalt.err (!%p1082_p7)
}
  0x66   : > { %916 = dma.hbm_to_vmem [thread:$0]  (!%p1245_p5), %s1411_s6, 1024, %s308_s25, [#allocation13], %s1155_s18, %s1155_s18, %s1156_s16  }
  0x67   : > { %p1424_p2 = scmp.ne.s32.totalorder %s1419_s13, 0 }
  0x68   : > { %p1425_p3 = scmp.ne.s32.totalorder (!%p1424_p2), %s1418_s12, 0 }
  0x69   : > { %326 = sbr.rel (%p1424_p2) target bundleno = 645 (0x285), region = 52 }
  0x70   : > { %1125 = dma.done.wait (%p1425_p3), [#allocation7], 128  }
  0x71   : > { %1127 = vsyncadd (%p1425_p3), [#allocation7], 4294967168 }
  0x72   : > { %1129 = dma.done.wait (%p1425_p3), [#allocation10], 384  }
  0x73   : > { %1131 = vsyncadd (%p1425_p3), [#allocation10], 4294966912 }
  0x74   : > { %1133 = dma.done.wait (%p1425_p3), [#allocation13], 1024  }
  0x75   : > { %1135 = vsyncadd (%p1425_p3), [#allocation13], 4294966272  ;;  %v1158_v0 = vmov 0.0|0.0   ;;  %v1159_v1 = vmov 0.0   ;;  %vm1160_vm0 = vmmov 0   ;;  %vm447_vm1 = vcmask 64512  }
  0x76   : > { %868 = vmatprep.subr.bf16.mxu1 %v1158_v0  ;;  %844 = vmatprep.subr.mxu0 %v1159_v1  ;;  %v371_v2 = vld [vmem:[#allocation11] sm:$0xff]  ;;  %v372_v3 = vld [vmem:[#allocation11 + $0x8] sm:$0xff]  ;;  %v368_v6 = vld [vmem:[#allocation9] sm:$0xff]  ;;  %vm373_vm2 = vcmask 130048   ;;  %p813_p5 = scmp.ne.s32.totalorder %s1142_s27, 0 }
  0x77   : > { %846 = vmatprep.mubr.msk.f32.mxu0 %vm1160_vm0, %v1159_v1  ;;  %841 = vmatprep.mubr.msk.f32.mxu1 %vm1160_vm0, %v1159_v1  ;;  %v369_v4 = vld [vmem:[%s1408_s3] sm:$0xff]  ;;  %v869_v5 = vpack.c.bf16 %v372_v3, %v371_v2  ;;  %vm529_vm3 = vcmask (!%p813_p5), 516096   ;;  %vm533_vm4 = vcmask (!%p813_p5), 523264   ;;  %v1161_v14 = vmov (!%p813_p5), 0.0  }
  0x78   : > { %845 = vmatpush3.msra.mxu0 %v369_v4  ;;  %v370_v7 = vld [vmem:[#allocation6] sm:$0xff]  ;;  %530 = vst.msk [vmem:[#allocation2] sm:$0x1] (!%p813_p5), %vm529_vm3, %v1161_v14  ;;  %531 = vst.msk [vmem:[#allocation3] sm:$0x1] (!%p813_p5), %vm529_vm3, %v1161_v14 }
  0x79   : > { %847 = vmatmul.mubr.msk.f32.vlgmr.msra.gmra.mrb[0].mxu0 %vm447_vm1, %v368_v6  ;;  %870 = vmatpush3.bf16.msra.mxu1 %v869_v5  ;;  %v564_v40 = vld [vmem:[%s1409_s4] sm:$0x1] (!%p813_p5) }
  0x7a   : > { %v569_v43 = vld [vmem:[%s1410_s5] sm:$0x1] (!%p813_p5) }
  0x7c   : > { %842 = vmatmul.mubr.msk.f32.vlgmr.msra.gmra.mrb[0].mxu1 %vm373_vm2, %v370_v7 }
  0x7f   : > { %v532_v26 = vld [vmem:[#allocation2] sm:$0x1] (!%p813_p5)  ;;  %v544_v29 = vld [vmem:[#allocation3] sm:$0x1] (!%p813_p5) }
 0x14a   : > { %524 = sbr.rel (%p813_p5) target bundleno = 387 (0x183), region = 72 }
 0x14c   : > { %v517_v8 = vpop.f32.mrb[0].mxu0 }
 0x14d   : > { %v848_v9 = vpop.f32.mrb[1].mxu0 }
 0x14f   : > { %v443_v10 = vpop.f32.mrb[0].mxu1 }
 0x150   : > { %v518_v11 = vadd.f32 %v517_v8, %v443_v10  ;;  %v843_v12 = vpop.f32.mrb[1].mxu1 }
 0x152   : > { %v545_v13 = vmul.f32 %v518_v11, %v518_v11  ;;  %v534_v15 = vsel %vm533_vm4, %v518_v11, 0.0 }
 0x153   : > { %v535_v16 = vrot.slane %v534_v15, 4 }
 0x154   : > { %v546_v17 = vsel %vm533_vm4, %v545_v13, 0.0 }
 0x155   : > { %v547_v18 = vrot.slane %v546_v17, 4  ;;  %v536_v19 = vadd.f32 %v535_v16, %v534_v15 }
 0x157   : > { %v548_v20 = vadd.f32 %v547_v18, %v546_v17  ;;  %v537_v21 = vrot.slane %v536_v19, 2 }
 0x159   : > { %v549_v22 = vrot.slane %v548_v20, 2  ;;  %v538_v23 = vadd.f32 %v537_v21, %v536_v19 }
 0x15b   : > { %v550_v24 = vadd.f32 %v549_v22, %v548_v20  ;;  %v539_v25 = vrot.slane %v538_v23, 1 }
 0x15d   : > { %v551_v27 = vrot.slane %v550_v24, 1  ;;  %v540_v28 = vadd.f32 %v539_v25, %v538_v23 }
 0x15f   : > { %v552_v30 = vadd.f32 %v551_v27, %v550_v24  ;;  %v541_v31 = vadd.f32 %v540_v28, %v532_v26 }
 0x161   : > { %v553_v32 = vadd.f32 %v552_v30, %v544_v29  ;;  %543 = vst.msk [vmem:[#allocation2] sm:$0x1] %vm529_vm3, %v541_v31 }
 0x163   : > { %554 = vst.msk [vmem:[#allocation3] sm:$0x1] %vm529_vm3, %v553_v32 }
 0x168   : > { %v558_v33 = vld [vmem:[#allocation2] sm:$0x1] }
 0x169   : > { %v559_v34 = vmul.f32 0.125, %v558_v33 }
 0x16a   : > { %v560_v35 = vld [vmem:[#allocation3] sm:$0x1] }
 0x16b   : > { %v561_v36 = vmul.f32 0.125, %v560_v35  ;;  %v562_v37 = vmul.f32 %v559_v34, %v559_v34 }
 0x16d   : > { %v563_v38 = vsub.f32 %v561_v36, %v562_v37 }
 0x16f   : > { %v565_v39 = vadd.f32 1e-05, %v563_v38 }
 0x171   : > { %970 = vrsqrt.f32 %v565_v39 }
 0x17b   : > { %v971_v41 = vpop.eup %970 }
 0x17c   : > { %v567_v42 = vmul.f32 %v971_v41, %v564_v40 }
 0x17e   : > { %568 = vst.msk [vmem:[#allocation4] sm:$0x1] %vm529_vm3, %v567_v42  ;;  %v570_v44 = vmul.f32 %v567_v42, %v559_v34 }
 0x180   : > { %v571_v45 = vsub.f32 %v569_v43, %v570_v44 }
 0x182   : > { %572 = vst.msk [vmem:[#allocation5] sm:$0x1] %vm529_vm3, %v571_v45 }
 0x183 PF: > { %p814_p8 = scmp.ne.s32.totalorder %s1142_s27, 1 }
 0x184   : > { %v594_v46 = vld [vmem:[#allocation12] sm:$0xff] (!%p814_p8)  ;;  %v595_v47 = vld [vmem:[#allocation12 + $0x8] sm:$0xff] (!%p814_p8)  ;;  %v596_v48 = vld [vmem:[#allocation12 + $0x10] sm:$0xff] (!%p814_p8)  ;;  %v1162_v49 = vmov (!%p814_p8), 0.0|0.0   ;;  %vm1163_vm5 = vmmov (!%p814_p8), 0   ;;  %v1164_v52 = vmov (!%p814_p8), 0.0  }
 0x185   : > { %576 = sbr.rel (%p814_p8) target bundleno = 622 (0x26e), region = 84  ;;  %871 = vmatprep.subr.bf16.mxu0 (!%p814_p8), %v1162_v49  ;;  %v872_v50 = vpack.c.bf16 (!%p814_p8), %v595_v47, %v594_v46  ;;  %v597_v51 = vld [vmem:[#allocation12 + $0x18] sm:$0xff] (!%p814_p8)  ;;  %865 = vmatprep.mubr.msk.f32.mxu0 (!%p814_p8), %vm1163_vm5, %v1164_v52  ;;  %v598_v57 = vld [vmem:[#allocation12 + $0x20] sm:$0xff] (!%p814_p8)  ;;  %v599_v58 = vld [vmem:[#allocation12 + $0x28] sm:$0xff] (!%p814_p8)  ;;  %vm609_vm6 = vcmask (!%p814_p8), 523264  }
 0x186   : > { %v815_v53 = vld [vmem:[#allocation4] ss:$0 sm:$0xff] (!%p814_p8)  ;;  %v875_v54 = vpack.c.bf16 (!%p814_p8), %v597_v51, %v596_v48  ;;  %v878_v60 = vpack.c.bf16 (!%p814_p8), %v599_v58, %v598_v57  ;;  %v600_v61 = vld [vmem:[#allocation12 + $0x30] sm:$0xff] (!%p814_p8)  ;;  %v817_v1 = vld [vmem:[%s1412_s7] ss:$0 sm:$0xff] (!%p814_p8) }
 0x187   : > { %873 = vmatpush3.bf16.msra.mxu0 (!%p814_p8), %v872_v50  ;;  %v584_v55 = vmul.f32 (!%p814_p8), %v815_v53, %v518_v11  ;;  %v601_v62 = vld [vmem:[#allocation12 + $0x38] sm:$0xff] (!%p814_p8) }
 0x188   : > { %874 = vmatprep.subr.bf16.mxu0 (!%p814_p8), %v1162_v49  ;;  %v881_v63 = vpack.c.bf16 (!%p814_p8), %v601_v62, %v600_v61 }
 0x189   : > { %v816_v56 = vld [vmem:[#allocation5] ss:$0 sm:$0xff] (!%p814_p8) }
 0x18a   : > { %v592_v59 = vadd.f32 (!%p814_p8), %v816_v56, %v584_v55 }
 0x18b   : > { %876 = vmatpush3.bf16.msra.mxu0 (!%p814_p8), %v875_v54 }
 0x18c   : > { %972 = vtanh.f32 %v592_v59  ;;  %877 = vmatprep.subr.bf16.mxu0 %v1162_v49 }
 0x18f   : > { %879 = vmatpush3.bf16.msra.mxu0 %v878_v60 }
 0x190   : > { %880 = vmatprep.subr.bf16.mxu0 %v1162_v49 }
 0x193   : > { %882 = vmatpush3.bf16.msra.mxu0 %v881_v63 }
 0x196   : > { %v973_v0 = vpop.eup %972 }
 0x197   : > { %866 = vmatmul.mubr.msk.f32.vlgmr.msra.gmra.mrb[0].mxu0 %vm609_vm6, %v973_v0 }
 0x26a   : > { %v679_v2 = vpop.f32.mrb[0].mxu0 }
 0x26b   : > { %v680_v3 = vadd.f32 %v817_v1, %v679_v2  ;;  %v867_v4 = vpop.f32.mrb[1].mxu0 }
 0x26d   : > { %683 = vst [vmem:[#allocation14] sm:$0xff] %v680_v3 }
 0x26e PF: > { %s1426_s16 = sadd.s32 4294967295, %s1150_s29   ;;  %s1165_s25 = smov [#allocation14]  }
 0x26f   : > { %p1371_p6 = scmp.eq.s32.totalorder %s1426_s16, 1  ;;  %s699_s26 = sshll.u32 %s1165_s25, 4  ;;  %s700_s26 = int_to_ptr.vmem [resolvable:$true] %s699_s26 }
 0x270   : > { %s1086_s30 = scalar_lea.vmem %s700_s26, 128  ;;  %s1092_s17 = scalar_lea.vmem %s700_s26, 256 }
 0x271   : > { %p1087_p9 = scmp.ne.s32.totalorder %s700_s26, %s1086_s30  ;;  %p1093_p12 = scmp.lt.s32.totalorder %s700_s26, %s700_s26 }
 0x272   : > { %p1094_p13 = scmp.lt.s32.totalorder %s1092_s17, %s1086_s30 }
 0x273   : > { %p1088_p10 = pnand %p1087_p9, %p1371_p6 }
 0x274   : > { %p1095_p0 = por %p1094_p13, %p1093_p12 }
 0x275   : > { %p1089_p11 = pneg %p1088_p10 }
 0x277   : > { %p1096_p1 = pnand %p1095_p0, %p1089_p11 }
 0x279   : > { %1099 = shalt.err (!%p1096_p1)
}
 0x27a   : > { %s1100_s21 = scalar_lea.hbm %s1413_s8, 128 }
 0x27b   : > { %p1101_p4 = scmp.ne.s32.totalorder %s1413_s8, %s1100_s21  ;;  %p1106_p3 = scmp.lt.u32.totalorder %s1100_s21, %s1413_s8 }
 0x27d   : > { %p1102_p7 = pnand %p1101_p4, %p1371_p6 }
 0x27f   : > { %p1103_p2 = pneg %p1102_p7 }
 0x281   : > { %p1108_p5 = pnand %p1106_p3, %p1103_p2 }
 0x283   : > { %1111 = shalt.err (!%p1108_p5)
}
 0x284   : > { %901 = dma.vmem_to_hbm [thread:$0]  (%p1371_p6), %s700_s26, 128, %s1413_s8, [#allocation8]  }
 0x285 PF: > { %p930_p8 = scmp.ge.s32.totalorder %s1150_s29, 2  ;;  %s1428_s15 = sadd.s32 4294967294, %s1150_s29  }
 0x286   : > { %p931_p9 = scmp.eq.s32.totalorder %s1428_s15, 1 }
 0x288   : > { %p918_p10 = pnand %p931_p9, %p930_p8 }
 0x28a   : > { %1137 = dma.done.wait (!%p918_p10), [#allocation8], 128  }
 0x28b   : > { %1139 = vsyncadd (!%p918_p10), [#allocation8], 4294967168  ;;  %s24_s29 = sadd.s32 1, %s1150_s29   ;;  %s1429_s27 = smov %s1146_s28 }
 0x28c   : > { %p21_p11 = scmp.ge.s32.totalorder %s24_s29, 4   ;;  %s1430_s28 = smov %s1432_s14 }
 0x28e   :  { %23 = sbr.rel (!%p21_p11) target bundleno = 6 (0x6), region = 119 }
 0x295   :  { %717 = vsyncpa [#allocation7], 1 }
 0x296   :  { %719 = vsyncpa [#allocation7 + $0x1], 1 }
 0x297   :  { %720 = vsyncpa [#allocation10], 1 }
 0x298   :  { %721 = vsyncpa [#allocation13], 1 }
 0x299   :  { %722 = vsyncpa [#allocation8], 1 }
 0x29a   :  { %724 = vsyncpa [#allocation8 + $0x1], 1 }

</bundles_post_ra>
